<compile_context>
chip_gen: v7x
topology: tpu7x:2x2x1
jax: 0.10.0
libtpu: 0.0.40
codegen_flags: <defaults>
</compile_context>

<pallas_src>
import functools

import jax
import jax.numpy as jnp
from jax.experimental import pallas as pl
from jax.experimental.pallas import tpu as pltpu


def _round_up(x, m):
    return ((x + m - 1) // m) * m


def _vae_kernel(x_ref, we1_ref, be1_ref, wml_ref, bml_ref, eps_ref,
                wd1_ref, bd1_ref, wd2_ref, bd2_ref,
                recon_ref, ml_ref, *, latent):
    # ---- encoder layer 1: in-kernel f32->bf16 cast, bf16 matmul, f32 acc ----
    x = x_ref[...].astype(jnp.bfloat16)                     # (TB, D_in)
    h = jnp.dot(x, we1_ref[...],
                preferred_element_type=jnp.float32) + be1_ref[...]
    h = jnp.maximum(h, 0.0)                                 # ReLU (f32)

    # ---- fused mean|logvar projection: one (H, 2L) matmul ----
    ml = jnp.dot(h.astype(jnp.bfloat16), wml_ref[...],
                 preferred_element_type=jnp.float32) + bml_ref[...]
    ml_ref[...] = ml                                        # single fused write

    mean = ml[:, :latent]
    logvar = ml[:, latent:]

    # ---- reparameterization: z = mean + eps * exp(logvar / 2)  (f32/EUP) ----
    z = mean + eps_ref[...] * jnp.exp(logvar * 0.5)

    # ---- decoder ----
    hd = jnp.dot(z.astype(jnp.bfloat16), wd1_ref[...],
                 preferred_element_type=jnp.float32) + bd1_ref[...]
    hd = jnp.maximum(hd, 0.0)                               # ReLU (f32)
    logits = jnp.dot(hd.astype(jnp.bfloat16), wd2_ref[...],
                     preferred_element_type=jnp.float32) + bd2_ref[...]
    recon_ref[...] = jax.nn.sigmoid(logits).astype(recon_ref.dtype)  # bf16 store


def vae_forward(x_img, params, eps, *, batch_tile=512):
    """x_img: (B, C, H, W) float32. Returns (recon_x [bf16], z_mean, z_logvar)."""
    B = x_img.shape[0]
    d_in = x_img.shape[1] * x_img.shape[2] * x_img.shape[3]

    (we1, be1, wmu, bmu, wlv, blv, wd1, bd1, wd2, bd2) = params
    H = we1.shape[1]
    L = wmu.shape[1]

    # --- parameter prep (tiny, once per call): bf16 weights, fused mu|lv ---
    we1_b = we1.astype(jnp.bfloat16)
    wml_b = jnp.concatenate([wmu, wlv], axis=1).astype(jnp.bfloat16)  # (H, 2L)
    bml = jnp.concatenate([bmu, blv], axis=1)                         # (1, 2L)
    wd1_b = wd1.astype(jnp.bfloat16)
    wd2_b = wd2.astype(jnp.bfloat16)

    # --- batch tiling: no host-side pad; ragged last tile handled by Pallas ---
    if B < 8:
        TB = B                                 # block == full batch dim
    else:
        TB = min(batch_tile, _round_up(B, 8))
        # prefer >= 2 grid steps so both v7x TensorCores get work
        if pl.cdiv(B, TB) < 2 and TB >= 16:
            TB = _round_up(pl.cdiv(B, 2), 8)

    # per-step streamed bytes (double-buffered x f32 in, recon bf16 out, eps, ml)
    def _tile_bytes(tb):
        return 2 * tb * (d_in * 4 + d_in * 2 + L * 4 + 2 * L * 4)

    # keep streamed tiles well under v7x's 64 MiB VMEM
    while TB > 8 and _tile_bytes(TB) > 24 * (1 << 20):
        TB = max(8, _round_up(TB // 2, 8))

    grid = (pl.cdiv(B, TB),)

    # rough VMEM need incl. double-buffered resident weights
    weight_bytes = 2 * (d_in * H * 2 + H + H * 2 * L * 2 + 2 * L
                        + L * H * 2 + H + H * d_in * 2 + d_in) * 4
    vmem_need = _tile_bytes(TB) + weight_bytes

    compiler_kwargs = dict(dimension_semantics=("parallel",))
    if vmem_need > 14 * (1 << 20):             # v5e default scoped limit is 16 MiB
        compiler_kwargs["vmem_limit_bytes"] = int(
            min(max(vmem_need * 5 // 4, 16 * (1 << 20)), 48 * (1 << 20)))

    x2d = x_img.reshape(B, d_in)               # f32; cast happens in-kernel
    eps_f = eps.astype(jnp.float32)

    def row_tile(shape):              # tiled over the batch grid axis
        return pl.BlockSpec(shape, lambda i: (i, 0))

    def resident(shape):              # constant index_map -> stays in VMEM
        return pl.BlockSpec(shape, lambda i: (0, 0))

    in_specs = [
        row_tile((TB, d_in)),         # x (f32, streamed)
        resident(we1_b.shape),        # we1
        resident(be1.shape),          # be1
        resident(wml_b.shape),        # wmu|wlv fused
        resident(bml.shape),          # bmu|blv fused
        row_tile((TB, L)),            # eps (streamed)
        resident(wd1_b.shape),        # wd1
        resident(bd1.shape),          # bd1
        resident(wd2_b.shape),        # wd2
        resident(bd2.shape),          # bd2
    ]
    out_specs = (
        row_tile((TB, d_in)),         # recon (bf16)
        row_tile((TB, 2 * L)),        # mean|logvar fused (f32)
    )

    recon, ml = pl.pallas_call(
        functools.partial(_vae_kernel, latent=L),
        grid=grid,
        in_specs=in_specs,
        out_specs=out_specs,
        out_shape=(
            jax.ShapeDtypeStruct((B, d_in), jnp.bfloat16),
            jax.ShapeDtypeStruct((B, 2 * L), jnp.float32),
        ),
        compiler_params=pltpu.CompilerParams(**compiler_kwargs),
    )(x2d, we1_b, be1, wml_b, bml, eps_f, wd1_b, bd1, wd2_b, bd2)

    # recon stays bf16 (saves ~2x HBM write traffic); upcast downstream if needed.
    recon_x = recon.reshape(x_img.shape)
    mean = ml[:, :L]
    logvar = ml[:, L:]
    return recon_x, mean, logvar


def init_params(key, d_in, hidden, latent):
    ks = jax.random.split(key, 5)
    scale = 0.02
    we1 = scale * jax.random.normal(ks[0], (d_in, hidden), jnp.float32)
    be1 = jnp.zeros((1, hidden), jnp.float32)
    wmu = scale * jax.random.normal(ks[1], (hidden, latent), jnp.float32)
    bmu = jnp.zeros((1, latent), jnp.float32)
    wlv = scale * jax.random.normal(ks[2], (hidden, latent), jnp.float32)
    blv = jnp.zeros((1, latent), jnp.float32)
    wd1 = scale * jax.random.normal(ks[3], (latent, hidden), jnp.float32)
    bd1 = jnp.zeros((1, hidden), jnp.float32)
    wd2 = scale * jax.random.normal(ks[4], (hidden, d_in), jnp.float32)
    bd2 = jnp.zeros((1, d_in), jnp.float32)
    return (we1, be1, wmu, bmu, wlv, blv, wd1, bd1, wd2, bd2)


if __name__ == "__main__":
    key = jax.random.PRNGKey(0)
    k_x, k_p, k_eps = jax.random.split(key, 3)

    B, C, Him, Wim = 2, 4, 16, 16          # small NCHW input
    D_IN = C * Him * Wim                    # 1024
    HIDDEN, LATENT = 128, 32

    x_img = jax.random.normal(k_x, (B, C, Him, Wim), jnp.float32)
    params = init_params(k_p, D_IN, HIDDEN, LATENT)
    # epsilon plays the role of torch.randn(mean.size(0), mean.size(1))
    eps = jax.random.normal(k_eps, (B, LATENT), jnp.float32)

    recon_x, z_mean, z_logvar = vae_forward(x_img, params, eps)
    jax.block_until_ready((recon_x, z_mean, z_logvar))

    assert recon_x.shape == (B, C, Him, Wim)
    assert z_mean.shape == (B, LATENT)
    assert z_logvar.shape == (B, LATENT)

    # ---- sanity check against a plain-JAX reference that mirrors the
    #      kernel's numerics (bf16 matmul inputs, f32 accumulation).
    #      NOTE: vs a true f32 torch VAE expect ~1e-2 relative divergence. ----
    (we1, be1, wmu, bmu, wlv, blv, wd1, bd1, wd2, bd2) = params
    bf = jnp.bfloat16
    xf = x_img.reshape(B, D_IN).astype(bf)
    h = jnp.maximum(
        jnp.dot(xf, we1.astype(bf), preferred_element_type=jnp.float32) + be1, 0.0)
    hb = h.astype(bf)
    m_ref = jnp.dot(hb, wmu.astype(bf), preferred_element_type=jnp.float32) + bmu
    lv_ref = jnp.dot(hb, wlv.astype(bf), preferred_element_type=jnp.float32) + blv
    z = (m_ref + eps * jnp.exp(lv_ref * 0.5)).astype(bf)
    hd = jnp.maximum(
        jnp.dot(z, wd1.astype(bf), preferred_element_type=jnp.float32) + bd1, 0.0)
    logits = jnp.dot(hd.astype(bf), wd2.astype(bf),
                     preferred_element_type=jnp.float32) + bd2
    r_ref = jax.nn.sigmoid(logits).reshape(B, C, Him, Wim)

    # recon is stored in bf16 -> compare with bf16-level tolerance
    assert jnp.allclose(recon_x.astype(jnp.float32), r_ref, atol=1.5e-2), \
        float(jnp.max(jnp.abs(recon_x.astype(jnp.float32) - r_ref)))
    assert jnp.allclose(z_mean, m_ref, atol=1e-4), \
        float(jnp.max(jnp.abs(z_mean - m_ref)))
    assert jnp.allclose(z_logvar, lv_ref, atol=1e-4), \
        float(jnp.max(jnp.abs(z_logvar - lv_ref)))

    print("KERNEL_OK")
</pallas_src>

<mosaic_0001>
module attributes {stable_mosaic.version = 11 : i64} {
  func.func @_vae_kernel(%arg0: i32, %arg1: memref<2x1024xf32, #tpu.memory_space<vmem>>, %arg2: memref<1024x128xbf16, #tpu.memory_space<vmem>>, %arg3: memref<1x128xf32, #tpu.memory_space<vmem>>, %arg4: memref<128x64xbf16, #tpu.memory_space<vmem>>, %arg5: memref<1x64xf32, #tpu.memory_space<vmem>>, %arg6: memref<2x32xf32, #tpu.memory_space<vmem>>, %arg7: memref<32x128xbf16, #tpu.memory_space<vmem>>, %arg8: memref<1x128xf32, #tpu.memory_space<vmem>>, %arg9: memref<128x1024xbf16, #tpu.memory_space<vmem>>, %arg10: memref<1x1024xf32, #tpu.memory_space<vmem>>, %arg11: memref<2x1024xbf16, #tpu.memory_space<vmem>>, %arg12: memref<2x64xf32, #tpu.memory_space<vmem>>) attributes {dimension_semantics = [#tpu.dimension_semantics<parallel>], iteration_bounds = array<i64: 1>, scalar_prefetch = 0 : i64, scratch_operands = 0 : i64, tpu.core_type = #tpu.core_type<tc>, window_params = [{transform_indices = @transform_0, window_bounds = array<i64: 2, 1024>}, {pipeline_mode = #tpu.pipeline_mode<synchronous>, transform_indices = @transform_1, window_bounds = array<i64: 1024, 128>}, {pipeline_mode = #tpu.pipeline_mode<synchronous>, transform_indices = @transform_2, window_bounds = array<i64: 1, 128>}, {pipeline_mode = #tpu.pipeline_mode<synchronous>, transform_indices = @transform_3, window_bounds = array<i64: 128, 64>}, {pipeline_mode = #tpu.pipeline_mode<synchronous>, transform_indices = @transform_4, window_bounds = array<i64: 1, 64>}, {transform_indices = @transform_5, window_bounds = array<i64: 2, 32>}, {pipeline_mode = #tpu.pipeline_mode<synchronous>, transform_indices = @transform_6, window_bounds = array<i64: 32, 128>}, {pipeline_mode = #tpu.pipeline_mode<synchronous>, transform_indices = @transform_7, window_bounds = array<i64: 1, 128>}, {pipeline_mode = #tpu.pipeline_mode<synchronous>, transform_indices = @transform_8, window_bounds = array<i64: 128, 1024>}, {pipeline_mode = #tpu.pipeline_mode<synchronous>, transform_indices = @transform_9, window_bounds = array<i64: 1, 1024>}, {transform_indices = @transform_10, window_bounds = array<i64: 2, 1024>}, {transform_indices = @transform_11, window_bounds = array<i64: 2, 64>}]} {
    %c0 = arith.constant 0 : index
    %c0_0 = arith.constant 0 : index
    %0 = vector.load %arg1[%c0, %c0_0] : memref<2x1024xf32, #tpu.memory_space<vmem>>, vector<2x1024xf32>
    %1 = arith.truncf %0 : vector<2x1024xf32> to vector<2x1024xbf16>
    %c0_1 = arith.constant 0 : index
    %c0_2 = arith.constant 0 : index
    %2 = vector.load %arg2[%c0_1, %c0_2] : memref<1024x128xbf16, #tpu.memory_space<vmem>>, vector<1024x128xbf16>
    %cst = arith.constant dense<0.000000e+00> : vector<2x128xf32>
    %3 = tpu.matmul %1, %2, %cst {dimension_numbers = #tpu.dot_dimension_numbers<[1], [0], [0], [1], [0, 0, 1, 1], [], []>} : vector<2x1024xbf16>, vector<1024x128xbf16>, vector<2x128xf32> -> vector<2x128xf32>
    %c0_3 = arith.constant 0 : index
    %c0_4 = arith.constant 0 : index
    %4 = vector.load %arg3[%c0_3, %c0_4] : memref<1x128xf32, #tpu.memory_space<vmem>>, vector<1x128xf32>
    %5 = vector.broadcast %4 : vector<1x128xf32> to vector<2x128xf32>
    %6 = arith.addf %3, %5 : vector<2x128xf32>
    %cst_5 = arith.constant 0.000000e+00 : f32
    %7 = vector.broadcast %cst_5 : f32 to vector<2x128xf32>
    %8 = arith.maximumf %6, %7 : vector<2x128xf32>
    %9 = arith.truncf %8 : vector<2x128xf32> to vector<2x128xbf16>
    %c0_6 = arith.constant 0 : index
    %c0_7 = arith.constant 0 : index
    %10 = vector.load %arg4[%c0_6, %c0_7] : memref<128x64xbf16, #tpu.memory_space<vmem>>, vector<128x64xbf16>
    %cst_8 = arith.constant dense<0.000000e+00> : vector<2x64xf32>
    %11 = tpu.matmul %9, %10, %cst_8 {dimension_numbers = #tpu.dot_dimension_numbers<[1], [0], [0], [1], [0, 0, 1, 1], [], []>} : vector<2x128xbf16>, vector<128x64xbf16>, vector<2x64xf32> -> vector<2x64xf32>
    %c0_9 = arith.constant 0 : index
    %c0_10 = arith.constant 0 : index
    %12 = vector.load %arg5[%c0_9, %c0_10] : memref<1x64xf32, #tpu.memory_space<vmem>>, vector<1x64xf32>
    %13 = vector.broadcast %12 : vector<1x64xf32> to vector<2x64xf32>
    %14 = arith.addf %11, %13 : vector<2x64xf32>
    %c0_11 = arith.constant 0 : index
    %c0_12 = arith.constant 0 : index
    %15 = vector.load %arg12[%c0_11, %c0_12] : memref<2x64xf32, #tpu.memory_space<vmem>>, vector<2x64xf32>
    tpu.vector_store %arg12[%c0_11, %c0_12], %14 {strides = array<i32>} : memref<2x64xf32, #tpu.memory_space<vmem>>, vector<2x64xf32>,
    %16 = vector.extract_strided_slice %14 {offsets = [0, 0], sizes = [2, 32], strides = [1, 1]} : vector<2x64xf32> to vector<2x32xf32>
    %17 = vector.extract_strided_slice %14 {offsets = [0, 32], sizes = [2, 32], strides = [1, 1]} : vector<2x64xf32> to vector<2x32xf32>
    %c0_13 = arith.constant 0 : index
    %c0_14 = arith.constant 0 : index
    %18 = vector.load %arg6[%c0_13, %c0_14] : memref<2x32xf32, #tpu.memory_space<vmem>>, vector<2x32xf32>
    %cst_15 = arith.constant 5.000000e-01 : f32
    %19 = vector.broadcast %cst_15 : f32 to vector<2x32xf32>
    %20 = arith.mulf %17, %19 : vector<2x32xf32>
    %21 = math.exp %20 : vector<2x32xf32>
    %22 = arith.mulf %18, %21 : vector<2x32xf32>
    %23 = arith.addf %16, %22 : vector<2x32xf32>
    %24 = arith.truncf %23 : vector<2x32xf32> to vector<2x32xbf16>
    %c0_16 = arith.constant 0 : index
    %c0_17 = arith.constant 0 : index
    %25 = vector.load %arg7[%c0_16, %c0_17] : memref<32x128xbf16, #tpu.memory_space<vmem>>, vector<32x128xbf16>
    %cst_18 = arith.constant dense<0.000000e+00> : vector<2x128xf32>
    %26 = tpu.matmul %24, %25, %cst_18 {dimension_numbers = #tpu.dot_dimension_numbers<[1], [0], [0], [1], [0, 0, 1, 1], [], []>} : vector<2x32xbf16>, vector<32x128xbf16>, vector<2x128xf32> -> vector<2x128xf32>
    %c0_19 = arith.constant 0 : index
    %c0_20 = arith.constant 0 : index
    %27 = vector.load %arg8[%c0_19, %c0_20] : memref<1x128xf32, #tpu.memory_space<vmem>>, vector<1x128xf32>
    %28 = vector.broadcast %27 : vector<1x128xf32> to vector<2x128xf32>
    %29 = arith.addf %26, %28 : vector<2x128xf32>
    %cst_21 = arith.constant 0.000000e+00 : f32
    %30 = vector.broadcast %cst_21 : f32 to vector<2x128xf32>
    %31 = arith.maximumf %29, %30 : vector<2x128xf32>
    %32 = arith.truncf %31 : vector<2x128xf32> to vector<2x128xbf16>
    %c0_22 = arith.constant 0 : index
    %c0_23 = arith.constant 0 : index
    %33 = vector.load %arg9[%c0_22, %c0_23] : memref<128x1024xbf16, #tpu.memory_space<vmem>>, vector<128x1024xbf16>
    %cst_24 = arith.constant dense<0.000000e+00> : vector<2x1024xf32>
    %34 = tpu.matmul %32, %33, %cst_24 {dimension_numbers = #tpu.dot_dimension_numbers<[1], [0], [0], [1], [0, 0, 1, 1], [], []>} : vector<2x128xbf16>, vector<128x1024xbf16>, vector<2x1024xf32> -> vector<2x1024xf32>
    %c0_25 = arith.constant 0 : index
    %c0_26 = arith.constant 0 : index
    %35 = vector.load %arg10[%c0_25, %c0_26] : memref<1x1024xf32, #tpu.memory_space<vmem>>, vector<1x1024xf32>
    %36 = vector.broadcast %35 : vector<1x1024xf32> to vector<2x1024xf32>
    %37 = arith.addf %34, %36 : vector<2x1024xf32>
    %38 = arith.negf %37 : vector<2x1024xf32>
    %39 = math.exp %38 : vector<2x1024xf32>
    %cst_27 = arith.constant 1.000000e+00 : f32
    %40 = vector.broadcast %cst_27 : f32 to vector<2x1024xf32>
    %41 = arith.addf %40, %39 : vector<2x1024xf32>
    %42 = arith.divf %40, %41 : vector<2x1024xf32>
    %43 = arith.truncf %42 : vector<2x1024xf32> to vector<2x1024xbf16>
    %c0_28 = arith.constant 0 : index
    %c0_29 = arith.constant 0 : index
    %44 = vector.load %arg11[%c0_28, %c0_29] : memref<2x1024xbf16, #tpu.memory_space<vmem>>, vector<2x1024xbf16>
    tpu.vector_store %arg11[%c0_28, %c0_29], %43 {strides = array<i32>} : memref<2x1024xbf16, #tpu.memory_space<vmem>>, vector<2x1024xbf16>,
    return
  }
  func.func @transform_0(%arg0: i32) -> (i32, i32) {
    %c0_i32 = arith.constant 0 : i32
    %c0_i32_0 = arith.constant 0 : i32
    return %arg0, %c0_i32 : i32, i32
  }
  func.func @transform_1(%arg0: i32) -> (i32, i32) {
    %c0_i32 = arith.constant 0 : i32
    %c0_i32_0 = arith.constant 0 : i32
    %c0_i32_1 = arith.constant 0 : i32
    return %c0_i32, %c0_i32_0 : i32, i32
  }
  func.func @transform_2(%arg0: i32) -> (i32, i32) {
    %c0_i32 = arith.constant 0 : i32
    %c0_i32_0 = arith.constant 0 : i32
    %c0_i32_1 = arith.constant 0 : i32
    return %c0_i32, %c0_i32_0 : i32, i32
  }
  func.func @transform_3(%arg0: i32) -> (i32, i32) {
    %c0_i32 = arith.constant 0 : i32
    %c0_i32_0 = arith.constant 0 : i32
    %c0_i32_1 = arith.constant 0 : i32
    return %c0_i32, %c0_i32_0 : i32, i32
  }
  func.func @transform_4(%arg0: i32) -> (i32, i32) {
    %c0_i32 = arith.constant 0 : i32
    %c0_i32_0 = arith.constant 0 : i32
    %c0_i32_1 = arith.constant 0 : i32
    return %c0_i32, %c0_i32_0 : i32, i32
  }
  func.func @transform_5(%arg0: i32) -> (i32, i32) {
    %c0_i32 = arith.constant 0 : i32
    %c0_i32_0 = arith.constant 0 : i32
    return %arg0, %c0_i32 : i32, i32
  }
  func.func @transform_6(%arg0: i32) -> (i32, i32) {
    %c0_i32 = arith.constant 0 : i32
    %c0_i32_0 = arith.constant 0 : i32
    %c0_i32_1 = arith.constant 0 : i32
    return %c0_i32, %c0_i32_0 : i32, i32
  }
  func.func @transform_7(%arg0: i32) -> (i32, i32) {
    %c0_i32 = arith.constant 0 : i32
    %c0_i32_0 = arith.constant 0 : i32
    %c0_i32_1 = arith.constant 0 : i32
    return %c0_i32, %c0_i32_0 : i32, i32
  }
  func.func @transform_8(%arg0: i32) -> (i32, i32) {
    %c0_i32 = arith.constant 0 : i32
    %c0_i32_0 = arith.constant 0 : i32
    %c0_i32_1 = arith.constant 0 : i32
    return %c0_i32, %c0_i32_0 : i32, i32
  }
  func.func @transform_9(%arg0: i32) -> (i32, i32) {
    %c0_i32 = arith.constant 0 : i32
    %c0_i32_0 = arith.constant 0 : i32
    %c0_i32_1 = arith.constant 0 : i32
    return %c0_i32, %c0_i32_0 : i32, i32
  }
  func.func @transform_10(%arg0: i32) -> (i32, i32) {
    %c0_i32 = arith.constant 0 : i32
    %c0_i32_0 = arith.constant 0 : i32
    return %arg0, %c0_i32 : i32, i32
  }
  func.func @transform_11(%arg0: i32) -> (i32, i32) {
    %c0_i32 = arith.constant 0 : i32
    %c0_i32_0 = arith.constant 0 : i32
    return %arg0, %c0_i32 : i32, i32
  }
}

</mosaic_0001>

<bundles_post_ra>
// kernel: tpu_custom_call.1
= control target key start
LH: loop header
LB: loop body
LE: loop exit
PB: predicated region body
PF: predicated region fallthrough
CT: control target
= control target key end

     0   :  { %17 = vsyncpa [#allocation3], 0  ;;  %s2435_s0 = inlined_call_operand.vmem [shape: f32[2,1024], index: 0, kind: input, shape index: {}]   ;;  %s2436_s1 = inlined_call_operand.hbm [shape: bf16[1024,128], index: 1, kind: input, shape index: {}]   ;;  %s2437_s2 = inlined_call_operand.vmem [shape: f32[1,128], index: 2, kind: input, shape index: {}]   ;;  %s2438_s3 = inlined_call_operand.vmem [shape: bf16[128,64], index: 3, kind: input, shape index: {}]   ;;  %s2439_s4 = inlined_call_operand.vmem [shape: f32[1,64], index: 4, kind: input, shape index: {}]   ;;  %s2440_s5 = inlined_call_operand.vmem [shape: f32[2,32], index: 5, kind: input, shape index: {}]   ;;  %s2441_s6 = inlined_call_operand.vmem [shape: bf16[32,128], index: 6, kind: input, shape index: {}]   ;;  %s2442_s7 = inlined_call_operand.vmem [shape: f32[1,128], index: 7, kind: input, shape index: {}]   ;;  %s2443_s8 = inlined_call_operand.hbm [shape: bf16[128,1024], index: 8, kind: input, shape index: {}]   ;;  %s2444_s9 = inlined_call_operand.vmem [shape: f32[1,1024], index: 9, kind: input, shape index: {}]   ;;  %s2445_s10 = inlined_call_operand.hbm [shape: bf16[2,1024], index: 10, kind: output, shape index: {0}]   ;;  %s2446_s11 = inlined_call_operand.hbm [shape: f32[2,64], index: 11, kind: output, shape index: {1}]  }
   0x1   :  { %18 = vsyncpa [#allocation6], 0 }
   0x2   :  { %19 = vsyncpa [#allocation4], 0 }
   0x3   :  { %20 = vsyncpa [#allocation9], 0  ;;  %s2233_s17 = smov [#allocation2]   ;;  %s2137_s21 = scalar_lea.hbm %s2436_s1, 8192 }
   0x4   :  { %s28_s18 = sshll.u32 %s2233_s17, 4  ;;  %p2138_p0 = scmp.ne.s32.totalorder %s2436_s1, %s2137_s21  ;;  %s29_s18 = int_to_ptr.vmem [resolvable:$true] %s28_s18 }
   0x5   :  { %p2141_p1 = scmp.lt.u32.totalorder %s2137_s21, %s2436_s1 }
   0x7   :  { %p2143_p2 = pnand %p2141_p1, %p2138_p0 }
   0x9   :  { %2146 = shalt.err (!%p2143_p2)
}
   0xa   :  { %s2147_s26 = scalar_lea.vmem %s29_s18, 8192  ;;  %p2152_p4 = scmp.lt.s32.totalorder %s29_s18, %s29_s18 }
   0xb   :  { %p2148_p3 = scmp.ne.s32.totalorder %s29_s18, %s2147_s26  ;;  %p2153_p5 = scmp.lt.s32.totalorder %s2147_s26, %s2147_s26 }
   0xd   :  { %p2154_p6 = por %p2153_p5, %p2152_p4 }
   0xf   :  { %p2155_p7 = pnand %p2154_p6, %p2148_p3 }
  0x11   :  { %2158 = shalt.err (!%p2155_p7)
}
  0x12   :  { %s2234_s27 = smov 64   ;;  %s2235_s28 = smov 4  }
  0x13   :  { %34 = dma.hbm_to_vmem [thread:$0]  %s2436_s1, 8192, %s29_s18, [#allocation3], %s2234_s27, %s2234_s27, %s2235_s28  }
  0x14   :  { %s2236_s12 = smov [#allocation5]   ;;  %s2159_s16 = scalar_lea.hbm %s2443_s8, 8192 }
  0x15   :  { %s52_s13 = sshll.u32 %s2236_s12, 4  ;;  %p2160_p8 = scmp.ne.s32.totalorder %s2443_s8, %s2159_s16  ;;  %s53_s13 = int_to_ptr.vmem [resolvable:$true] %s52_s13 }
  0x16   :  { %p2163_p9 = scmp.lt.u32.totalorder %s2159_s16, %s2443_s8 }
  0x18   :  { %p2165_p10 = pnand %p2163_p9, %p2160_p8 }
  0x1a   :  { %2168 = shalt.err (!%p2165_p10)
}
  0x1b   :  { %s2169_s22 = scalar_lea.vmem %s53_s13, 8192  ;;  %p2174_p12 = scmp.lt.s32.totalorder %s53_s13, %s53_s13 }
  0x1c   :  { %p2170_p11 = scmp.ne.s32.totalorder %s53_s13, %s2169_s22  ;;  %p2175_p13 = scmp.lt.s32.totalorder %s2169_s22, %s2169_s22 }
  0x1e   :  { %p2176_p0 = por %p2175_p13, %p2174_p12 }
  0x20   :  { %p2177_p1 = pnand %p2176_p0, %p2170_p11 }
  0x22   :  { %2180 = shalt.err (!%p2177_p1)
}
  0x23   :  { %s2237_s1 = smov 512   ;;  %s2238_s18 = smov 32  }
  0x24   :  { %58 = dma.hbm_to_vmem [thread:$0]  %s2443_s8, 8192, %s53_s13, [#allocation6], %s2237_s1, %s2237_s1, %s2238_s18  }
  0x25   :  { %2225 = dma.done.wait [#allocation3], 8192  }
  0x26   :  { %2226 = vsyncadd [#allocation3], 4294959104 }
  0x27   :  { %2227 = dma.done.wait [#allocation6], 8192  }
  0x28   :  { %2228 = vsyncadd [#allocation6], 4294959104  ;;  %v2027_v0 = vld [vmem:[#allocation2 + $0x40] sm:$0xff]   ;;  %v2031_v4 = vld [vmem:[#allocation2 + $0x48] sm:$0xff]   ;;  %v2239_v22 = vmov 1983009808   ;;  %v76_v24 = vlaneseq }
  0x29   :  { %v2028_v1 = vld [vmem:[#allocation2 + $0xc0] sm:$0xff]   ;;  %1885 = vmatprep.subr.bf16.mxu0 %v2027_v0  ;;  %v2032_v5 = vld [vmem:[#allocation2 + $0xc8] sm:$0xff]   ;;  %v2035_v8 = vld [vmem:[#allocation2 + $0x50] sm:$0xff]   ;;  %v74_v23 = vunpack.c.l.s4 %v2239_v22  ;;  %vm2241_vm0 = vmmov 0   ;;  %vm914_vm1 = vcmask 517120   ;;  %vm950_vm2 = vcmask 261120  }
  0x2a   :  { %v2029_v2 = vld [vmem:[#allocation2] sm:$0xff]   ;;  %1907 = vmatprep.subr.bf16.mxu1 %v2028_v1  ;;  %v2033_v6 = vld [vmem:[#allocation2 + $0x8] sm:$0xff]   ;;  %v2036_v9 = vld [vmem:[#allocation2 + $0xd0] sm:$0xff]   ;;  %v2331_v30 = vshrl.u32 %v76_v24, 7 }
  0x2b   :  { %v2030_v3 = vld [vmem:[#allocation2 + $0x80] sm:$0xff]   ;;  %1886 = vmatpush3.bf16.msra.mxu0 %v2029_v2  ;;  %v2034_v7 = vld [vmem:[#allocation2 + $0x88] sm:$0xff]   ;;  %v2037_v10 = vld [vmem:[#allocation2 + $0x10] sm:$0xff]   ;;  %v75_v29 = vunpack.c.0.s8 %v74_v23 }
  0x2c   :  { %1908 = vmatpush3.bf16.msra.mxu1 %v2030_v3  ;;  %1887 = vmatprep.subr.bf16.mxu0 %v2031_v4  ;;  %v2038_v11 = vld [vmem:[#allocation2 + $0x90] sm:$0xff]   ;;  %v2039_v12 = vld [vmem:[#allocation2 + $0x58] sm:$0xff]   ;;  %v2043_v16 = vld [vmem:[#allocation2 + $0x60] sm:$0xff]  }
  0x2d   :  { %1909 = vmatprep.subr.bf16.mxu1 %v2032_v5  ;;  %v2040_v13 = vld [vmem:[#allocation2 + $0xd8] sm:$0xff]   ;;  %v2044_v17 = vld [vmem:[#allocation2 + $0xe0] sm:$0xff]   ;;  %v2047_v20 = vld [vmem:[#allocation2 + $0x68] sm:$0xff]   ;;  %v2334_v35 = vsub.s32 %v75_v29, %v2331_v30 }
  0x2e   :  { %v2041_v14 = vld [vmem:[#allocation2 + $0x18] sm:$0xff]   ;;  %v2045_v18 = vld [vmem:[#allocation2 + $0x20] sm:$0xff]   ;;  %v2048_v21 = vld [vmem:[#allocation2 + $0xe8] sm:$0xff]  }
  0x2f   :  { %1888 = vmatpush3.bf16.msra.mxu0 %v2033_v6  ;;  %v2042_v15 = vld [vmem:[#allocation2 + $0x98] sm:$0xff]   ;;  %v2046_v19 = vld [vmem:[#allocation2 + $0xa0] sm:$0xff]   ;;  %v2049_v25 = vld [vmem:[#allocation2 + $0x28] sm:$0xff]  }
  0x30   :  { %1910 = vmatpush3.bf16.msra.mxu1 %v2034_v7  ;;  %1889 = vmatprep.subr.bf16.mxu0 %v2035_v8  ;;  %v2050_v26 = vld [vmem:[#allocation2 + $0xa8] sm:$0xff]   ;;  %v2051_v27 = vld [vmem:[#allocation2 + $0x70] sm:$0xff]   ;;  %v2055_v33 = vld [vmem:[#allocation2 + $0x78] sm:$0xff]  }
  0x31   :  { %1911 = vmatprep.subr.bf16.mxu1 %v2036_v9  ;;  %v2052_v28 = vld [vmem:[#allocation2 + $0xf0] sm:$0xff]   ;;  %v2056_v34 = vld [vmem:[#allocation2 + $0xf8] sm:$0xff]   ;;  %v68_v38 = vld [vmem:[%s2435_s0] sm:$0xff] }
  0x32   :  { %v2053_v31 = vld [vmem:[#allocation2 + $0x30] sm:$0xff]   ;;  %v2057_v36 = vld [vmem:[#allocation2 + $0x38] sm:$0xff]   ;;  %v79_v39 = vrot.slane %v68_v38, %v2334_v35  ;;  %v72_v40 = vcombine.high %v68_v38, %v68_v38  ;;  %v2060_v41 = vld [vmem:[#allocation2 + $0x140] sm:$0xff]  }
  0x33   :  { %1890 = vmatpush3.bf16.msra.mxu0 %v2037_v10  ;;  %v2054_v32 = vld [vmem:[#allocation2 + $0xb0] sm:$0xff]   ;;  %v2058_v37 = vld [vmem:[#allocation2 + $0xb8] sm:$0xff]   ;;  %v2061_v42 = vld [vmem:[#allocation2 + $0x1c0] sm:$0xff]  }
  0x34   :  { %1912 = vmatpush3.bf16.msra.mxu1 %v2038_v11  ;;  %1891 = vmatprep.subr.bf16.mxu0 %v2039_v12  ;;  %v87_v43 = vcombine.high %v79_v39, %v79_v39  ;;  %v86_v44 = vrot.slane %v72_v40, %v2334_v35  ;;  %v114_v45 = vpack.c.bf16 %v79_v39, %v79_v39  ;;  %v2062_v46 = vld [vmem:[#allocation2 + $0x100] sm:$0xff]   ;;  %v2064_v51 = vld [vmem:[#allocation2 + $0x148] sm:$0xff]   ;;  %v2068_v56 = vld [vmem:[#allocation2 + $0x150] sm:$0xff]  }
  0x35   :  { %1913 = vmatprep.subr.bf16.mxu1 %v2040_v13  ;;  %v2063_v49 = vld [vmem:[#allocation2 + $0x180] sm:$0xff]   ;;  %v2065_v53 = vld [vmem:[#allocation2 + $0x1c8] sm:$0xff]   ;;  %v2069_v57 = vld [vmem:[#allocation2 + $0x1d0] sm:$0xff]  }
  0x36   :  { %v115_v47 = vpack.c.bf16 %v87_v43, %v87_v43  ;;  %v88_v48 = vcombine.high %v86_v44, %v86_v44  ;;  %v116_v50 = vpack.c.bf16 %v86_v44, %v86_v44  ;;  %v2066_v54 = vld [vmem:[#allocation2 + $0x108] sm:$0xff]   ;;  %v2070_v58 = vld [vmem:[#allocation2 + $0x110] sm:$0xff]   ;;  %v2072_v60 = vld [vmem:[#allocation2 + $0x158] sm:$0xff]  }
  0x37   :  { %1892 = vmatpush3.bf16.msra.mxu0 %v2041_v14  ;;  %v2067_v55 = vld [vmem:[#allocation2 + $0x188] sm:$0xff]   ;;  %v2071_v59 = vld [vmem:[#allocation2 + $0x190] sm:$0xff]   ;;  %v2073_v61 = vld [vmem:[#allocation2 + $0x1d8] sm:$0xff]  }
  0x38   :  { %1914 = vmatpush3.bf16.msra.mxu1 %v2042_v15  ;;  %1893 = vmatprep.subr.bf16.mxu0 %v2043_v16  ;;  %v117_v52 = vpack.c.bf16 %v88_v48, %v88_v48  ;;  %v2074_v62 = vld [vmem:[#allocation2 + $0x118] sm:$0xff]   ;;  %v2076_v0 = vld [vmem:[#allocation2 + $0x160] sm:$0xff]   ;;  %v2080_v4 = vld [vmem:[#allocation2 + $0x168] sm:$0xff]  }
  0x39   :  { %1915 = vmatprep.subr.bf16.mxu1 %v2044_v17  ;;  %673 = vmatprep.mubr.bf16.mxu0 %v115_v47  ;;  %v2075_v63 = vld [vmem:[#allocation2 + $0x198] sm:$0xff]   ;;  %v2077_v1 = vld [vmem:[#allocation2 + $0x1e0] sm:$0xff]   ;;  %v2081_v5 = vld [vmem:[#allocation2 + $0x1e8] sm:$0xff]  }
  0x3a   :  { %713 = vmatprep.mubr.bf16.mxu1 %v117_v52  ;;  %v2078_v2 = vld [vmem:[#allocation2 + $0x120] sm:$0xff]   ;;  %v2082_v6 = vld [vmem:[#allocation2 + $0x128] sm:$0xff]   ;;  %v2084_v8 = vld [vmem:[#allocation2 + $0x170] sm:$0xff]  }
  0x3b   :  { %1894 = vmatpush3.bf16.msra.mxu0 %v2045_v18  ;;  %v2079_v3 = vld [vmem:[#allocation2 + $0x1a0] sm:$0xff]   ;;  %v2083_v7 = vld [vmem:[#allocation2 + $0x1a8] sm:$0xff]   ;;  %v2085_v9 = vld [vmem:[#allocation2 + $0x1f0] sm:$0xff]  }
  0x3c   :  { %1916 = vmatpush3.bf16.msra.mxu1 %v2046_v19  ;;  %1895 = vmatprep.subr.bf16.mxu0 %v2047_v20  ;;  %v2086_v10 = vld [vmem:[#allocation2 + $0x130] sm:$0xff]   ;;  %v2088_v12 = vld [vmem:[#allocation2 + $0x178] sm:$0xff]   ;;  %v69_v15 = vld [vmem:[%s2435_s0 + $0x8] sm:$0xff] }
  0x3d   :  { %1917 = vmatprep.subr.bf16.mxu1 %v2048_v21  ;;  %v2087_v11 = vld [vmem:[#allocation2 + $0x1b0] sm:$0xff]   ;;  %v2089_v13 = vld [vmem:[#allocation2 + $0x1f8] sm:$0xff]   ;;  %v96_v17 = vrot.slane %v69_v15, %v2334_v35  ;;  %v89_v18 = vcombine.high %v69_v15, %v69_v15 }
  0x3e   :  { %v2090_v14 = vld [vmem:[#allocation2 + $0x138] sm:$0xff]   ;;  %v2095_v29 = vld [vmem:[%s2438_s3 + $0x10] sm:$0xff]  }
  0x3f   :  { %1896 = vmatpush3.bf16.msra.mxu0 %v2049_v25  ;;  %v2091_v16 = vld [vmem:[#allocation2 + $0x1b8] sm:$0xff]   ;;  %v104_v19 = vcombine.high %v96_v17, %v96_v17  ;;  %v103_v20 = vrot.slane %v89_v18, %v2334_v35  ;;  %v118_v21 = vpack.c.bf16 %v96_v17, %v96_v17  ;;  %v1005_v17 = vld [vmem:[#allocation5 + $0x48] sm:$0xff] }
  0x40   :  { %1918 = vmatpush3.bf16.msra.mxu1 %v2050_v26  ;;  %1897 = vmatprep.subr.bf16.mxu0 %v2051_v27  ;;  %v2093_v26 = vld [vmem:[%s2438_s3] sm:$0xff]   ;;  %v2240_v27 = vmov 0.0   ;;  %v2100_v35 = vld [vmem:[%s2438_s3 + $0x38] sm:$0xff]   ;;  %v1009_v18 = vld [vmem:[#allocation5 + $0x68] sm:$0xff] }
  0x41   :  { %1919 = vmatprep.subr.bf16.mxu1 %v2052_v28  ;;  %v119_v22 = vpack.c.bf16 %v104_v19, %v104_v19  ;;  %v105_v23 = vcombine.high %v103_v20, %v103_v20  ;;  %v120_v24 = vpack.c.bf16 %v103_v20, %v103_v20  ;;  %v2094_v28 = vld [vmem:[%s2438_s3 + $0x8] sm:$0xff]   ;;  %v1820_v19 = vcombine.high %v1005_v17, %v1009_v18 }
  0x42   :  { %v1819_v20 = vcombine.low %v1005_v17, %v1009_v18  ;;  %v1002_v17 = vld [vmem:[#allocation5 + $0x30] sm:$0xff]  ;;  %v999_v18 = vld [vmem:[#allocation5 + $0x18] sm:$0xff] }
  0x43   :  { %1898 = vmatpush3.bf16.msra.mxu0 %v2053_v31  ;;  %v121_v25 = vpack.c.bf16 %v105_v23, %v105_v23  ;;  %v2096_v31 = vld [vmem:[%s2438_s3 + $0x18] sm:$0xff]   ;;  %v1017_v23 = vld [vmem:[#allocation5 + $0xa8] sm:$0xff] }
  0x44   :  { %1920 = vmatpush3.bf16.msra.mxu1 %v2054_v32  ;;  %1899 = vmatprep.subr.bf16.mxu0 %v2055_v33  ;;  %v2097_v32 = vld [vmem:[%s2438_s3 + $0x20] sm:$0xff]   ;;  %v2098_v33 = vld [vmem:[%s2438_s3 + $0x28] sm:$0xff]  }
  0x45   :  { %1921 = vmatprep.subr.bf16.mxu1 %v2056_v34  ;;  %v2099_v34 = vld [vmem:[%s2438_s3 + $0x30] sm:$0xff]  }
  0x47   :  { %1900 = vmatpush3.bf16.msra.mxu0 %v2057_v36 }
  0x48   :  { %1922 = vmatpush3.bf16.msra.mxu1 %v2058_v37  ;;  %1929 = vmatprep.subr.bf16.mxu0 %v2060_v41  ;;  %v1731_v37 = vld [vmem:[%s2437_s2] ss:$0 sm:$0xff] }
  0x49   :  { %1951 = vmatprep.subr.bf16.mxu1 %v2061_v42 }
  0x4a   :  { %674 = vmatmul.mubr.bf16.vlgmr.msra.gmra.mrb[0].mxu0 %v114_v45 }
  0x4b   :  { %1930 = vmatpush3.bf16.msra.mxu0 %v2062_v46  ;;  %714 = vmatmul.mubr.bf16.vlgmr.msra.gmra.mrb[0].mxu1 %v116_v50 }
  0x4c   :  { %1931 = vmatprep.subr.bf16.mxu0 %v2064_v51  ;;  %1952 = vmatpush3.bf16.msra.mxu1 %v2063_v49 }
  0x4d   :  { %1953 = vmatprep.subr.bf16.mxu1 %v2065_v53  ;;  %753 = vmatprep.mubr.bf16.mxu0 %v119_v22  ;;  %v1013_v22 = vld [vmem:[#allocation5 + $0x88] sm:$0xff] }
  0x4e   :  { %793 = vmatprep.mubr.bf16.mxu1 %v121_v25  ;;  %v1827_v25 = vcombine.low %v1013_v22, %v1017_v23 }
  0x4f   :  { %1932 = vmatpush3.bf16.msra.mxu0 %v2066_v54 }
  0x50   :  { %1933 = vmatprep.subr.bf16.mxu0 %v2068_v56  ;;  %1954 = vmatpush3.bf16.msra.mxu1 %v2067_v55 }
  0x51   :  { %1955 = vmatprep.subr.bf16.mxu1 %v2069_v57 }
  0x53   :  { %1934 = vmatpush3.bf16.msra.mxu0 %v2070_v58 }
  0x54   :  { %1935 = vmatprep.subr.bf16.mxu0 %v2072_v60  ;;  %1956 = vmatpush3.bf16.msra.mxu1 %v2071_v59 }
  0x55   :  { %1957 = vmatprep.subr.bf16.mxu1 %v2073_v61 }
  0x57   :  { %1936 = vmatpush3.bf16.msra.mxu0 %v2074_v62 }
  0x58   :  { %1937 = vmatprep.subr.bf16.mxu0 %v2076_v0  ;;  %1958 = vmatpush3.bf16.msra.mxu1 %v2075_v63  ;;  %v2101_v63 = vld [vmem:[%s2441_s6] sm:$0xff]  }
  0x59   :  { %1959 = vmatprep.subr.bf16.mxu1 %v2077_v1  ;;  %v1796_v0 = vld [vmem:[%s2439_s4] ss:$0 sm:$0xff]  ;;  %s2242_s4 = smov 96  }
  0x5b   :  { %1938 = vmatpush3.bf16.msra.mxu0 %v2078_v2 }
  0x5c   :  { %1939 = vmatprep.subr.bf16.mxu0 %v2080_v4  ;;  %1960 = vmatpush3.bf16.msra.mxu1 %v2079_v3 }
  0x5d   :  { %1961 = vmatprep.subr.bf16.mxu1 %v2081_v5 }
  0x5f   :  { %1940 = vmatpush3.bf16.msra.mxu0 %v2082_v6 }
  0x60   :  { %1941 = vmatprep.subr.bf16.mxu0 %v2084_v8  ;;  %1962 = vmatpush3.bf16.msra.mxu1 %v2083_v7  ;;  %v2102_v8 = vld [vmem:[%s2441_s6 + $0x8] sm:$0xff]  }
  0x61   :  { %1963 = vmatprep.subr.bf16.mxu1 %v2085_v9  ;;  %v996_v9 = vld [vmem:[#allocation5] sm:$0xff] }
  0x63   :  { %1942 = vmatpush3.bf16.msra.mxu0 %v2086_v10  ;;  %v1000_v10 = vld [vmem:[#allocation5 + $0x20] sm:$0xff] }
  0x64   :  { %1943 = vmatprep.subr.bf16.mxu0 %v2088_v12  ;;  %1964 = vmatpush3.bf16.msra.mxu1 %v2087_v11  ;;  %v997_v11 = vld [vmem:[#allocation5 + $0x8] sm:$0xff]  ;;  %v1809_v12 = vcombine.low %v996_v9, %v1000_v10 }
  0x65   :  { %1965 = vmatprep.subr.bf16.mxu1 %v2089_v13  ;;  %v1810_v13 = vcombine.high %v996_v9, %v1000_v10  ;;  %v1056_v9 = vld [vmem:[#allocation5 + $0x1e0] sm:$0xff]  ;;  %v1053_v10 = vld [vmem:[#allocation5 + $0x1c8] sm:$0xff] }
  0x67   :  { %1944 = vmatpush3.bf16.msra.mxu0 %v2090_v14  ;;  %v1001_v14 = vld [vmem:[#allocation5 + $0x28] sm:$0xff] }
  0x68   :  { %1966 = vmatpush3.bf16.msra.mxu1 %v2091_v16  ;;  %1985 = vmatprep.subr.bf16.mxu0 %v2240_v27  ;;  %v1811_v15 = vcombine.low %v997_v11, %v1001_v14  ;;  %v1812_v16 = vcombine.high %v997_v11, %v1001_v14 }
  0x69   :  { %2005 = vmatprep.subr.bf16.mxu1 %v2240_v27 }
  0x6a   :  { %754 = vmatmul.mubr.bf16.vlgmr.msra.gmra.mrb[4].mxu0 %v118_v21 }
  0x6b   :  { %794 = vmatmul.mubr.bf16.vlgmr.msra.gmra.mrb[4].mxu1 %v120_v24  ;;  %1986 = vmatpush3.bf16.msra.mxu0 %v2093_v26  ;;  %v1828_v24 = vcombine.high %v1013_v22, %v1017_v23  ;;  %v1021_v26 = vld [vmem:[#allocation5 + $0xc8] sm:$0xff]  ;;  %v1003_v22 = vld [vmem:[#allocation5 + $0x38] sm:$0xff] }
  0x6c   :  { %1987 = vmatprep.subr.bf16.mxu0 %v2240_v27  ;;  %2001 = vmatprep.mubr.msk.bf16.mxu0 %vm2241_vm0, %v2240_v27  ;;  %v1815_v23 = vcombine.low %v999_v18, %v1003_v22 }
  0x6d   :  { %2009 = vmatprep.mubr.msk.bf16.mxu1 %vm2241_vm0, %v2240_v27  ;;  %2006 = vmatpush3.bf16.msra.mxu1 %v2101_v63  ;;  %v1036_v63 = vld [vmem:[#allocation5 + $0x140] sm:$0xff] }
  0x6e   :  { %2007 = vmatprep.subr.bf16.mxu1 %v2240_v27 }
  0x6f   :  { %1988 = vmatpush3.bf16.msra.mxu0 %v2094_v28 }
  0x70   :  { %1989 = vmatprep.subr.bf16.mxu0 %v2240_v27 }
  0x71   :  { %2008 = vmatpush3.bf16.msra.mxu1 %v2102_v8  ;;  %v1052_v8 = vld [vmem:[#allocation5 + $0x1c0] sm:$0xff] }
  0x72   :  { %1422 = vmatprep.subr.bf16.mxu1 %v1810_v13  ;;  %v1866_v11 = vcombine.high %v1052_v8, %v1056_v9  ;;  %v1865_v13 = vcombine.low %v1052_v8, %v1056_v9  ;;  %v1046_v8 = vld [vmem:[#allocation5 + $0x190] sm:$0xff] }
  0x73   :  { %1990 = vmatpush3.bf16.msra.mxu0 %v2095_v29  ;;  %v1050_v9 = vld [vmem:[#allocation5 + $0x1b0] sm:$0xff] }
  0x74   :  { %1991 = vmatprep.subr.bf16.mxu0 %v2240_v27 }
  0x77   :  { %1992 = vmatpush3.bf16.msra.mxu0 %v2096_v31  ;;  %v1029_v31 = vld [vmem:[#allocation5 + $0x108] sm:$0xff] }
  0x78   :  { %1993 = vmatprep.subr.bf16.mxu0 %v2240_v27 }
  0x7b   :  { %1994 = vmatpush3.bf16.msra.mxu0 %v2097_v32  ;;  %v1033_v32 = vld [vmem:[#allocation5 + $0x128] sm:$0xff] }
  0x7c   :  { %1995 = vmatprep.subr.bf16.mxu0 %v2240_v27 }
  0x7f   :  { %1996 = vmatpush3.bf16.msra.mxu0 %v2098_v33  ;;  %v1844_v33 = vcombine.high %v1029_v31, %v1033_v32 }
  0x80   :  { %1997 = vmatprep.subr.bf16.mxu0 %v2240_v27 }
  0x83   :  { %1998 = vmatpush3.bf16.msra.mxu0 %v2099_v34  ;;  %v1843_v34 = vcombine.low %v1029_v31, %v1033_v32  ;;  %v1010_v32 = vld [vmem:[#allocation5 + $0x70] sm:$0xff] }
  0x84   :  { %1999 = vmatprep.subr.bf16.mxu0 %v2240_v27  ;;  %v1025_v27 = vld [vmem:[#allocation5 + $0xe8] sm:$0xff] }
  0x85   :  { %v1836_v28 = vcombine.high %v1021_v26, %v1025_v27  ;;  %v1835_v29 = vcombine.low %v1021_v26, %v1025_v27 }
  0x87   :  { %2000 = vmatpush3.bf16.msra.mxu0 %v2100_v35  ;;  %v1037_v35 = vld [vmem:[#allocation5 + $0x148] sm:$0xff] }
  0x88   :  { %1463 = vmatprep.subr.bf16.mxu0 %v1812_v16  ;;  %v998_v16 = vld [vmem:[#allocation5 + $0x10] sm:$0xff] }
 0x11d   :  { %v1901_v36 = vpop.f32.mrb[0].mxu0 }
 0x11e   :  { %v1902_v38 = vpop.f32.mrb[1].mxu0  ;;  %v1923_v39 = vpop.f32.mrb[0].mxu1 }
 0x11f   :  { %v1903_v40 = vadd.f32 %v1902_v38, %v1901_v36  ;;  %v1904_v41 = vpop.f32.mrb[2].mxu0  ;;  %v1924_v42 = vpop.f32.mrb[1].mxu1  ;;  %v1041_v36 = vld [vmem:[#allocation5 + $0x168] sm:$0xff] }
 0x120   :  { %v1905_v43 = vpop.f32.mrb[3].mxu0  ;;  %v1925_v45 = vadd.f32 %v1924_v42, %v1923_v39  ;;  %v1926_v46 = vpop.f32.mrb[2].mxu1  ;;  %v1851_v38 = vcombine.low %v1037_v35, %v1041_v36  ;;  %v1045_v39 = vld [vmem:[#allocation5 + $0x188] sm:$0xff] }
 0x121   :  { %v676_v44 = vadd.f32 %v1903_v40, %v1731_v37  ;;  %v1927_v47 = vpop.f32.mrb[3].mxu1  ;;  %v1852_v37 = vcombine.high %v1037_v35, %v1041_v36  ;;  %v1049_v40 = vld [vmem:[#allocation5 + $0x1a8] sm:$0xff]  ;;  %v916_v43 = vld [vmem:[%s2440_s5] sm:$0x3] }
 0x122   :  { %v1860_v41 = vcombine.high %v1045_v39, %v1049_v40  ;;  %v1859_v42 = vcombine.low %v1045_v39, %v1049_v40  ;;  %v1004_v46 = vld [vmem:[#allocation5 + $0x40] sm:$0xff]  ;;  %v1014_v40 = vld [vmem:[#allocation5 + $0x90] sm:$0xff] }
 0x123   :  { %v716_v48 = vadd.f32 %v1925_v45, %v676_v44  ;;  %v1008_v47 = vld [vmem:[#allocation5 + $0x60] sm:$0xff] }
 0x13d   :  { %v1945_v49 = vpop.f32.mrb[4].mxu0 }
 0x13e   :  { %v1946_v50 = vpop.f32.mrb[5].mxu0  ;;  %v1967_v51 = vpop.f32.mrb[4].mxu1 }
 0x13f   :  { %v1947_v52 = vadd.f32 %v1946_v50, %v1945_v49  ;;  %v1948_v53 = vpop.f32.mrb[6].mxu0  ;;  %v1968_v54 = vpop.f32.mrb[5].mxu1  ;;  %v1818_v50 = vcombine.high %v1004_v46, %v1008_v47 }
 0x140   :  { %v1949_v55 = vpop.f32.mrb[7].mxu0  ;;  %v1969_v57 = vadd.f32 %v1968_v54, %v1967_v51  ;;  %v1970_v58 = vpop.f32.mrb[6].mxu1  ;;  %v1012_v51 = vld [vmem:[#allocation5 + $0x80] sm:$0xff]  ;;  %v1817_v53 = vcombine.low %v1004_v46, %v1008_v47 }
 0x141   :  { %v756_v56 = vadd.f32 %v1947_v52, %v716_v48  ;;  %v1971_v59 = vpop.f32.mrb[7].mxu1  ;;  %v1016_v52 = vld [vmem:[#allocation5 + $0xa0] sm:$0xff] }
 0x142   :  { %v1826_v54 = vcombine.high %v1012_v51, %v1016_v52  ;;  %v1020_v55 = vld [vmem:[#allocation5 + $0xc0] sm:$0xff] }
 0x143   :  { %v796_v60 = vadd.f32 %v1969_v57, %v756_v56  ;;  %v1024_v56 = vld [vmem:[#allocation5 + $0xe0] sm:$0xff]  ;;  %v1825_v57 = vcombine.low %v1012_v51, %v1016_v52  ;;  %v1027_v51 = vld [vmem:[#allocation5 + $0xf8] sm:$0xff] }
 0x144   :  { %v1834_v58 = vcombine.high %v1020_v55, %v1024_v56  ;;  %v1028_v59 = vld [vmem:[#allocation5 + $0x100] sm:$0xff] }
 0x145   :  { %v801_v61 = vmax.f32 %v796_v60, 0.0  ;;  %v1032_v60 = vld [vmem:[#allocation5 + $0x120] sm:$0xff] }
 0x147   :  { %v802_v62 = vpack.c.bf16 %v801_v61, %v801_v61  ;;  %v1833_v61 = vcombine.low %v1020_v55, %v1024_v56  ;;  %v1030_v56 = vld [vmem:[#allocation5 + $0x110] sm:$0xff] }
 0x149   :  { %2002 = vmatmul.mubr.bf16.vlgmr.msra.gmra.mrb[8].mxu0 %v802_v62  ;;  %v1842_v62 = vcombine.high %v1028_v59, %v1032_v60 }
 0x14a   :  { %1464 = vmatpush1.bf16.msra.mxu0 %v1811_v15 }
 0x14b   :  { %1465 = vmatprep.subr.bf16.mxu0 %v1820_v19  ;;  %v2243_v19 = vmov 0  }
 0x14c   :  { %1495 = vmatprep.mubr.bf16.mxu0 %v2243_v19 }
 0x14e   :  { %1466 = vmatpush1.bf16.msra.mxu0 %v1819_v20  ;;  %v1813_v20 = vcombine.low %v998_v16, %v1002_v17 }
 0x14f   :  { %1467 = vmatprep.subr.bf16.mxu0 %v1828_v24  ;;  %v1816_v24 = vcombine.high %v999_v18, %v1003_v22  ;;  %v1055_v18 = vld [vmem:[#allocation5 + $0x1d8] sm:$0xff] }
 0x152   :  { %1468 = vmatpush1.bf16.msra.mxu0 %v1827_v25  ;;  %v1805_v25 = vld [vmem:[%s2442_s7] ss:$0 sm:$0xff]  ;;  %s2244_s7 = smov [#allocation8]  }
 0x153   :  { %1469 = vmatprep.subr.bf16.mxu0 %v1836_v28  ;;  %s1717_s29 = sshll.u32 %s2244_s7, 4  ;;  %s1718_s29 = int_to_ptr.vmem [resolvable:$true] %s1717_s29 }
 0x154   :  { %s2181_s30 = scalar_lea.vmem %s1718_s29, 32  ;;  %p2186_p3 = scmp.lt.s32.totalorder %s1718_s29, %s1718_s29 }
 0x155   :  { %p2182_p2 = scmp.ne.s32.totalorder %s1718_s29, %s2181_s30  ;;  %p2187_p4 = scmp.lt.s32.totalorder %s2181_s30, %s2181_s30 }
 0x156   :  { %1470 = vmatpush1.bf16.msra.mxu0 %v1835_v29  ;;  %v1006_v29 = vld [vmem:[#allocation5 + $0x50] sm:$0xff] }
 0x157   :  { %1471 = vmatprep.subr.bf16.mxu0 %v1844_v33  ;;  %v1007_v33 = vld [vmem:[#allocation5 + $0x58] sm:$0xff]  ;;  %p2188_p5 = por %p2187_p4, %p2186_p3 }
 0x159   :  { %p2189_p6 = pnand %p2188_p5, %p2182_p2 }
 0x15a   :  { %1472 = vmatpush1.bf16.msra.mxu0 %v1843_v34  ;;  %v1011_v34 = vld [vmem:[#allocation5 + $0x78] sm:$0xff] }
 0x15b   :  { %1473 = vmatprep.subr.bf16.mxu0 %v1852_v37  ;;  %v1824_v39 = vcombine.high %v1007_v33, %v1011_v34 }
 0x15e   :  { %1474 = vmatpush1.bf16.msra.mxu0 %v1851_v38  ;;  %v1822_v38 = vcombine.high %v1006_v29, %v1010_v32 }
 0x15f   :  { %1475 = vmatprep.subr.bf16.mxu0 %v1860_v41  ;;  %v1018_v41 = vld [vmem:[#allocation5 + $0xb0] sm:$0xff] }
 0x160   :  { %v1830_v46 = vcombine.high %v1014_v40, %v1018_v41  ;;  %v1829_v52 = vcombine.low %v1014_v40, %v1018_v41 }
 0x162   :  { %1476 = vmatpush1.bf16.msra.mxu0 %v1859_v42  ;;  %v1015_v42 = vld [vmem:[#allocation5 + $0x98] sm:$0xff] }
 0x21c   :  { %v908_v1 = vpop.f32.mrb[8].mxu0 }
 0x21d   :  { %v2379_v2 = vadd.f32 %v1796_v0, %v908_v1  ;;  %v2003_v3 = vpop.f32.mrb[9].mxu0  ;;  %v1040_v0 = vld [vmem:[#allocation5 + $0x160] sm:$0xff]  ;;  %v1841_v1 = vcombine.low %v1028_v59, %v1032_v60  ;;  %v1035_v59 = vld [vmem:[#allocation5 + $0x138] sm:$0xff] }
 0x21e   :  { %v911_v4 = vpop.f32.mrb[10].mxu0  ;;  %v1044_v3 = vld [vmem:[#allocation5 + $0x180] sm:$0xff] }
 0x21f   :  { %v917_v5 = vmul.f32 0.5, %v2379_v2  ;;  %v2004_v6 = vpop.f32.mrb[11].mxu0  ;;  %915 = vst.msk [vmem:[#allocation8] sm:$0x3] %vm914_vm1, %v2379_v2  ;;  %v1048_v4 = vld [vmem:[#allocation5 + $0x1a0] sm:$0xff] }
 0x220   :  { %v1858_v6 = vcombine.high %v1044_v3, %v1048_v4 }
 0x221   :  { %v918_v7 = vmul.f32 1.442695, %v917_v5  ;;  %v1849_v5 = vcombine.low %v1036_v63, %v1040_v0 }
 0x223   :  { %2103 = vpow2.f32 %v918_v7  ;;  %v1857_v7 = vcombine.low %v1044_v3, %v1048_v4  ;;  %v1043_v3 = vld [vmem:[#allocation5 + $0x178] sm:$0xff] }
 0x22d   :  { %v2104_v21 = vpop.eup %2103 }
 0x22e   :  { %921 = vrot.lane.b32.xlu0 %v2104_v21, %s2242_s4  ;;  %v1814_v21 = vcombine.high %v998_v16, %v1002_v17  ;;  %v1054_v16 = vld [vmem:[#allocation5 + $0x1d0] sm:$0xff] }
 0x22f   :  { %v1058_v17 = vld [vmem:[#allocation5 + $0x1f0] sm:$0xff] }
 0x230   :  { %v1870_v22 = vcombine.high %v1054_v16, %v1058_v17 }
 0x2a0   :  { %v922_v44 = vpop.permute.xlu0 %921 }
 0x2a1   :  { %v924_v45 = vmul.f32 %v922_v44, %v916_v43  ;;  %v1019_v43 = vld [vmem:[#allocation5 + $0xb8] sm:$0xff]  ;;  %v1821_v44 = vcombine.low %v1006_v29, %v1010_v32 }
 0x2a2   :  { %v1832_v47 = vcombine.high %v1015_v42, %v1019_v43 }
 0x2a3   :  { %v925_v48 = vadd.f32 %v924_v45, %v2379_v2  ;;  %v1850_v2 = vcombine.high %v1036_v63, %v1040_v0  ;;  %v1823_v45 = vcombine.low %v1007_v33, %v1011_v34  ;;  %v1038_v0 = vld [vmem:[#allocation5 + $0x150] sm:$0xff] }
 0x2a5   :  { %v926_v49 = vpack.c.bf16 %v925_v48, %v925_v48  ;;  %v1022_v48 = vld [vmem:[#allocation5 + $0xd0] sm:$0xff] }
 0x2a7   :  { %2010 = vmatmul.mubr.msk.bf16.vlgmr.msra.gmra.mrb[8].mxu1 %vm950_vm2, %v926_v49  ;;  %v1026_v49 = vld [vmem:[#allocation5 + $0xf0] sm:$0xff] }
 0x2a8   :  { %1423 = vmatpush1.bf16.msra.mxu1 %v1809_v12  ;;  %v1057_v12 = vld [vmem:[#allocation5 + $0x1e8] sm:$0xff]  ;;  %1454 = vmatprep.mubr.bf16.mxu1 %v2243_v19  ;;  %v1837_v60 = vcombine.low %v1022_v48, %v1026_v49 }
 0x2a9   :  { %1424 = vmatprep.subr.bf16.mxu1 %v1818_v50  ;;  %v1867_v14 = vcombine.low %v1053_v10, %v1057_v12  ;;  %v1868_v15 = vcombine.high %v1053_v10, %v1057_v12  ;;  %v1023_v50 = vld [vmem:[#allocation5 + $0xd8] sm:$0xff] }
 0x2aa   :  { %v1840_v55 = vcombine.high %v1023_v50, %v1027_v51  ;;  %v1047_v10 = vld [vmem:[#allocation5 + $0x198] sm:$0xff] }
 0x2ab   :  { %1477 = vmatprep.subr.bf16.mxu0 %v1868_v15 }
 0x2ac   :  { %1425 = vmatpush1.bf16.msra.mxu1 %v1817_v53  ;;  %1478 = vmatpush1.bf16.msra.mxu0 %v1867_v14  ;;  %v1831_v53 = vcombine.low %v1015_v42, %v1019_v43  ;;  %v1862_v14 = vcombine.high %v1046_v8, %v1050_v9 }
 0x2ad   :  { %1426 = vmatprep.subr.bf16.mxu1 %v1826_v54  ;;  %1545 = vmatprep.subr.bf16.mxu0 %v1816_v24  ;;  %v1838_v54 = vcombine.high %v1022_v48, %v1026_v49  ;;  %v1869_v24 = vcombine.low %v1054_v16, %v1058_v17 }
 0x2b0   :  { %1427 = vmatpush1.bf16.msra.mxu1 %v1825_v57  ;;  %v1034_v57 = vld [vmem:[#allocation5 + $0x130] sm:$0xff] }
 0x2b1   :  { %1428 = vmatprep.subr.bf16.mxu1 %v1834_v58  ;;  %v1031_v58 = vld [vmem:[#allocation5 + $0x118] sm:$0xff]  ;;  %v1845_v4 = vcombine.low %v1030_v56, %v1034_v57 }
 0x2b2   :  { %v1848_v63 = vcombine.high %v1031_v58, %v1035_v59 }
 0x2b4   :  { %1429 = vmatpush1.bf16.msra.mxu1 %v1833_v61  ;;  %v1839_v61 = vcombine.low %v1023_v50, %v1027_v51 }
 0x2b5   :  { %1430 = vmatprep.subr.bf16.mxu1 %v1842_v62  ;;  %v1846_v62 = vcombine.high %v1030_v56, %v1034_v57 }
 0x2b8   :  { %1431 = vmatpush1.bf16.msra.mxu1 %v1841_v1  ;;  %v1042_v1 = vld [vmem:[#allocation5 + $0x170] sm:$0xff] }
 0x2b9   :  { %1432 = vmatprep.subr.bf16.mxu1 %v1850_v2  ;;  %v1039_v2 = vld [vmem:[#allocation5 + $0x158] sm:$0xff]  ;;  %v1853_v12 = vcombine.low %v1038_v0, %v1042_v1 }
 0x2bc   :  { %1433 = vmatpush1.bf16.msra.mxu1 %v1849_v5  ;;  %v1847_v5 = vcombine.low %v1031_v58, %v1035_v59 }
 0x2bd   :  { %1434 = vmatprep.subr.bf16.mxu1 %v1858_v6  ;;  %v1854_v6 = vcombine.high %v1038_v0, %v1042_v1 }
 0x2c0   :  { %1435 = vmatpush1.bf16.msra.mxu1 %v1857_v7  ;;  %v1856_v7 = vcombine.high %v1039_v2, %v1043_v3 }
 0x2c1   :  { %1436 = vmatprep.subr.bf16.mxu1 %v1866_v11  ;;  %v1051_v11 = vld [vmem:[#allocation5 + $0x1b8] sm:$0xff] }
 0x2c2   :  { %v1864_v15 = vcombine.high %v1047_v10, %v1051_v11 }
 0x2c4   :  { %1437 = vmatpush1.bf16.msra.mxu1 %v1865_v13  ;;  %v1855_v13 = vcombine.low %v1039_v2, %v1043_v3 }
 0x2c5   :  { %1504 = vmatprep.subr.bf16.mxu1 %v1814_v21  ;;  %v1863_v21 = vcombine.low %v1047_v10, %v1051_v11 }
 0x37a   :  { %v988_v26 = vpop.f32.mrb[8].mxu1 }
 0x37b   :  { %v989_v27 = vadd.f32 %v1805_v25, %v988_v26  ;;  %v2011_v28 = vpop.f32.mrb[9].mxu1 }
 0x37c   :  { %v991_v31 = vpop.f32.mrb[10].mxu1 }
 0x37d   :  { %v994_v35 = vmax.f32 %v989_v27, 0.0  ;;  %v2012_v36 = vpop.f32.mrb[11].mxu1 }
 0x37f   :  { %v2393_v37 = vpack.c.bf16 %v994_v35, %v994_v35 }
 0x381   :  { %1455 = vmatmul.mubr.bf16.vlgmr.msra.gmra.mrb[12].mxu1 %v2393_v37  ;;  %1496 = vmatmul.mubr.bf16.vlgmr.msra.gmra.mrb[12].mxu0 %v2393_v37 }
 0x382   :  { %1505 = vmatpush1.bf16.msra.mxu1 %v1813_v20  ;;  %1546 = vmatpush1.bf16.msra.mxu0 %v1815_v23  ;;  %v1861_v20 = vcombine.low %v1046_v8, %v1050_v9 }
 0x383   :  { %1506 = vmatprep.subr.bf16.mxu1 %v1822_v38  ;;  %1547 = vmatprep.subr.bf16.mxu0 %v1824_v39 }
 0x384   :  { %1536 = vmatprep.mubr.bf16.mxu1 %v2243_v19  ;;  %1577 = vmatprep.mubr.bf16.mxu0 %v2243_v19  ;;  %v1059_v19 = vld [vmem:[#allocation5 + $0x1f8] sm:$0xff] }
 0x385   :  { %v1872_v23 = vcombine.high %v1055_v18, %v1059_v19  ;;  %v1871_v25 = vcombine.low %v1055_v18, %v1059_v19 }
 0x386   :  { %1507 = vmatpush1.bf16.msra.mxu1 %v1821_v44  ;;  %1548 = vmatpush1.bf16.msra.mxu0 %v1823_v45 }
 0x387   :  { %1508 = vmatprep.subr.bf16.mxu1 %v1830_v46  ;;  %1549 = vmatprep.subr.bf16.mxu0 %v1832_v47 }
 0x38a   :  { %1509 = vmatpush1.bf16.msra.mxu1 %v1829_v52  ;;  %1550 = vmatpush1.bf16.msra.mxu0 %v1831_v53 }
 0x38b   :  { %1510 = vmatprep.subr.bf16.mxu1 %v1838_v54  ;;  %1551 = vmatprep.subr.bf16.mxu0 %v1840_v55 }
 0x38e   :  { %1511 = vmatpush1.bf16.msra.mxu1 %v1837_v60  ;;  %1552 = vmatpush1.bf16.msra.mxu0 %v1839_v61 }
 0x38f   :  { %1512 = vmatprep.subr.bf16.mxu1 %v1846_v62  ;;  %1553 = vmatprep.subr.bf16.mxu0 %v1848_v63 }
 0x392   :  { %1513 = vmatpush1.bf16.msra.mxu1 %v1845_v4  ;;  %1554 = vmatpush1.bf16.msra.mxu0 %v1847_v5 }
 0x393   :  { %1514 = vmatprep.subr.bf16.mxu1 %v1854_v6  ;;  %1555 = vmatprep.subr.bf16.mxu0 %v1856_v7 }
 0x396   :  { %1515 = vmatpush1.bf16.msra.mxu1 %v1853_v12  ;;  %1556 = vmatpush1.bf16.msra.mxu0 %v1855_v13 }
 0x397   :  { %1516 = vmatprep.subr.bf16.mxu1 %v1862_v14  ;;  %1557 = vmatprep.subr.bf16.mxu0 %v1864_v15 }
 0x39a   :  { %1517 = vmatpush1.bf16.msra.mxu1 %v1861_v20  ;;  %1558 = vmatpush1.bf16.msra.mxu0 %v1863_v21 }
 0x39b   :  { %1518 = vmatprep.subr.bf16.mxu1 %v1870_v22  ;;  %1559 = vmatprep.subr.bf16.mxu0 %v1872_v23 }
 0x39e   :  { %1519 = vmatpush1.bf16.msra.mxu1 %v1869_v24  ;;  %1560 = vmatpush1.bf16.msra.mxu0 %v1871_v25 }
 0x3a1   :  { %1537 = vmatmul.mubr.bf16.vlgmr.msra.gmra.mrb[16].mxu1 %v2393_v37  ;;  %1578 = vmatmul.mubr.bf16.vlgmr.msra.gmra.mrb[16].mxu0 %v2393_v37 }
 0x3a2   :  { %2192 = shalt.err (!%p2189_p6)
}
 0x3a3   :  { %s2193_s14 = scalar_lea.hbm %s2446_s11, 32 }
 0x3a4   :  { %p2194_p7 = scmp.ne.s32.totalorder %s2446_s11, %s2193_s14  ;;  %p2197_p8 = scmp.lt.u32.totalorder %s2193_s14, %s2446_s11 }
 0x3a6   :  { %p2199_p9 = pnand %p2197_p8, %p2194_p7 }
 0x3a8   :  { %2202 = shalt.err (!%p2199_p9)
}
 0x3a9   :  { %1720 = dma.vmem_to_hbm [thread:$0]  %s1718_s29, 32, %s2446_s11, [#allocation9]   ;;  %v1064_v26 = vsub.s32 0, %v2331_v30  ;;  %v1072_v27 = vsub.s32 2, %v2331_v30  ;;  %v1060_v28 = vld [vmem:[%s2444_s9] sm:$0xff]  ;;  %v1068_v29 = vsub.s32 1, %v2331_v30 }
 0x3aa   :  { %v1076_v31 = vsub.s32 3, %v2331_v30  ;;  %v2245_v60 = vmov 1966171168   ;;  %v1080_v62 = vsub.s32 4, %v2331_v30  ;;  %v1088_v63 = vsub.s32 6, %v2331_v30  ;;  %s2246_s9 = smov [#allocation7]  }
 0x3ab   :  { %v1065_v32 = vrot.slane %v1060_v28, %v1064_v26  ;;  %v1073_v33 = vrot.slane %v1060_v28, %v1072_v27  ;;  %v1069_v34 = vrot.slane %v1060_v28, %v1068_v29  ;;  %v1655_v61 = vunpack.c.l.s4 %v2245_v60  ;;  %s1707_s11 = sshll.u32 %s2246_s9, 4  ;;  %s1708_s11 = int_to_ptr.vmem [resolvable:$true] %s1707_s11 }
 0x3ac   :  { %v1077_v35 = vrot.slane %v1060_v28, %v1076_v31  ;;  %v1084_v1 = vsub.s32 5, %v2331_v30  ;;  %v1092_v2 = vsub.s32 7, %v2331_v30  ;;  %v1081_v5 = vrot.slane %v1060_v28, %v1080_v62  ;;  %s2203_s18 = scalar_lea.vmem %s1708_s11, 128  ;;  %p2208_p11 = scmp.lt.s32.totalorder %s1708_s11, %s1708_s11 }
 0x3ad   :  { %v1656_v0 = vunpack.c.0.s8 %v1655_v61  ;;  %v1089_v6 = vrot.slane %v1060_v28, %v1088_v63  ;;  %p2204_p10 = scmp.ne.s32.totalorder %s1708_s11, %s2203_s18  ;;  %p2209_p12 = scmp.lt.s32.totalorder %s2203_s18, %s2203_s18 }
 0x3ae   :  { %v1085_v9 = vrot.slane %v1060_v28, %v1084_v1  ;;  %v1093_v10 = vrot.slane %v1060_v28, %v1092_v2 }
 0x3af   :  { %v1659_v7 = vsub.s32 %v1656_v0, %v2331_v30  ;;  %p2210_p13 = por %p2209_p12, %p2208_p11 }
 0x3b1   :  { %p2211_p0 = pnand %p2210_p13, %p2204_p10 }
 0x454   :  { %v1456_v36 = vpop.f32.mrb[12].mxu1  ;;  %v1497_v37 = vpop.f32.mrb[12].mxu0 }
 0x455   :  { %v1457_v38 = vadd.f32 %v1456_v36, %v1065_v32  ;;  %v1498_v39 = vadd.f32 %v1497_v37, %v1073_v33  ;;  %v1458_v40 = vpop.f32.mrb[13].mxu1  ;;  %v1499_v41 = vpop.f32.mrb[13].mxu0 }
 0x456   :  { %v1459_v42 = vadd.f32 %v1458_v40, %v1069_v34  ;;  %v1500_v43 = vadd.f32 %v1499_v41, %v1077_v35  ;;  %v1460_v44 = vpop.f32.mrb[14].mxu1  ;;  %v1501_v45 = vpop.f32.mrb[14].mxu0 }
 0x457   :  { %v1873_v46 = vmul.f32 -1.442695, %v1457_v38  ;;  %v1875_v47 = vmul.f32 -1.442695, %v1498_v39  ;;  %v1461_v48 = vpop.f32.mrb[15].mxu1  ;;  %v1502_v49 = vpop.f32.mrb[15].mxu0 }
 0x458   :  { %v1874_v50 = vmul.f32 -1.442695, %v1459_v42  ;;  %v1876_v51 = vmul.f32 -1.442695, %v1500_v43 }
 0x459   :  { %2105 = vpow2.f32 %v1873_v46 }
 0x45a   :  { %2107 = vpow2.f32 %v1875_v47 }
 0x45b   :  { %2109 = vpow2.f32 %v1874_v50 }
 0x45c   :  { %2111 = vpow2.f32 %v1876_v51 }
 0x463   :  { %v2106_v52 = vpop.eup %2105 }
 0x464   :  { %v2108_v53 = vpop.eup %2107  ;;  %v1610_v54 = vadd.f32 1.0, %v2106_v52 }
 0x465   :  { %v2110_v55 = vpop.eup %2109  ;;  %v1612_v56 = vadd.f32 1.0, %v2108_v53 }
 0x466   :  { %v2112_v57 = vpop.eup %2111  ;;  %2113 = vrcp.f32 %v1610_v54  ;;  %v1611_v58 = vadd.f32 1.0, %v2110_v55 }
 0x467   :  { %2115 = vrcp.f32 %v1612_v56  ;;  %v1613_v59 = vadd.f32 1.0, %v2112_v57 }
 0x468   :  { %2117 = vrcp.f32 %v1611_v58 }
 0x469   :  { %2119 = vrcp.f32 %v1613_v59 }
 0x470   :  { %v2114_v3 = vpop.eup %2113 }
 0x471   :  { %v2116_v4 = vpop.eup %2115 }
 0x472   :  { %v2118_v8 = vpop.eup %2117 }
 0x473   :  { %v2120_v11 = vpop.eup %2119  ;;  %v1881_v12 = vpack.c.bf16 %v2118_v8, %v2114_v3 }
 0x474   :  { %v1538_v13 = vpop.f32.mrb[16].mxu1  ;;  %v1579_v14 = vpop.f32.mrb[16].mxu0  ;;  %v1882_v15 = vpack.c.bf16 %v2120_v11, %v2116_v4 }
 0x475   :  { %v1539_v16 = vadd.f32 %v1538_v13, %v1081_v5  ;;  %v1580_v17 = vadd.f32 %v1579_v14, %v1089_v6  ;;  %v1540_v18 = vpop.f32.mrb[17].mxu1  ;;  %v1581_v19 = vpop.f32.mrb[17].mxu0  ;;  %v1660_v20 = vrot.slane %v1881_v12, %v1659_v7 }
 0x476   :  { %v1541_v21 = vadd.f32 %v1540_v18, %v1085_v9  ;;  %v1582_v22 = vadd.f32 %v1581_v19, %v1093_v10  ;;  %v1542_v23 = vpop.f32.mrb[18].mxu1  ;;  %v1583_v24 = vpop.f32.mrb[18].mxu0  ;;  %v1667_v25 = vrot.slane %v1882_v15, %v1659_v7 }
 0x477   :  { %v1877_v26 = vmul.f32 -1.442695, %v1539_v16  ;;  %v1879_v30 = vmul.f32 -1.442695, %v1580_v17  ;;  %v1543_v27 = vpop.f32.mrb[19].mxu1  ;;  %v1584_v29 = vpop.f32.mrb[19].mxu0 }
 0x478   :  { %v1878_v28 = vmul.f32 -1.442695, %v1541_v21  ;;  %v1880_v31 = vmul.f32 -1.442695, %v1582_v22  ;;  %v1682_v32 = vcombine.low %v1660_v20, %v1667_v25 }
 0x479   :  { %2121 = vpow2.f32 %v1877_v26 }
 0x47a   :  { %2123 = vpow2.f32 %v1879_v30  ;;  %v1690_v50 = vrot.slane %v1682_v32, %v1659_v7 }
 0x47b   :  { %2125 = vpow2.f32 %v1878_v28 }
 0x47c   :  { %2127 = vpow2.f32 %v1880_v31 }
 0x483   :  { %v2122_v33 = vpop.eup %2121 }
 0x484   :  { %v2124_v34 = vpop.eup %2123  ;;  %v1614_v35 = vadd.f32 1.0, %v2122_v33 }
 0x485   :  { %v2126_v36 = vpop.eup %2125  ;;  %v1616_v37 = vadd.f32 1.0, %v2124_v34 }
 0x486   :  { %v2128_v38 = vpop.eup %2127  ;;  %2129 = vrcp.f32 %v1614_v35  ;;  %v1615_v39 = vadd.f32 1.0, %v2126_v36 }
 0x487   :  { %2131 = vrcp.f32 %v1616_v37  ;;  %v1617_v40 = vadd.f32 1.0, %v2128_v38 }
 0x488   :  { %2133 = vrcp.f32 %v1615_v39 }
 0x489   :  { %2135 = vrcp.f32 %v1617_v40 }
 0x490   :  { %v2130_v41 = vpop.eup %2129 }
 0x491   :  { %v2132_v42 = vpop.eup %2131 }
 0x492   :  { %v2134_v43 = vpop.eup %2133 }
 0x493   :  { %v2136_v44 = vpop.eup %2135  ;;  %v1883_v45 = vpack.c.bf16 %v2134_v43, %v2130_v41 }
 0x494   :  { %v1884_v46 = vpack.c.bf16 %v2136_v44, %v2132_v42 }
 0x495   :  { %v1674_v47 = vrot.slane %v1883_v45, %v1659_v7 }
 0x496   :  { %v1681_v48 = vrot.slane %v1884_v46, %v1659_v7 }
 0x498   :  { %v1683_v49 = vcombine.low %v1674_v47, %v1681_v48 }
 0x49a   :  { %v1697_v51 = vrot.slane %v1683_v49, %v1659_v7 }
 0x49c   :  { %v1698_v52 = vcombine.low %v1690_v50, %v1697_v51 }
 0x49e   :  { %1700 = vst [vmem:[#allocation7] sm:$0xff] %v1698_v52 }
 0x49f   :  { %2214 = shalt.err (!%p2211_p0)
}
 0x4a0   :  { %s2215_s2 = scalar_lea.hbm %s2445_s10, 128 }
 0x4a1   :  { %p2216_p1 = scmp.ne.s32.totalorder %s2445_s10, %s2215_s2  ;;  %p2219_p2 = scmp.lt.u32.totalorder %s2215_s2, %s2445_s10 }
 0x4a3   :  { %p2221_p3 = pnand %p2219_p2, %p2216_p1 }
 0x4a5   :  { %2224 = shalt.err (!%p2221_p3)
}
 0x4a6   :  { %1710 = dma.vmem_to_hbm [thread:$0]  %s1708_s11, 128, %s2445_s10, [#allocation4]  }
 0x4a7   :  { %2229 = dma.done.wait [#allocation4], 128  }
 0x4a8   :  { %2230 = vsyncadd [#allocation4], 4294967168 }
 0x4a9   :  { %2231 = dma.done.wait [#allocation9], 32  }
 0x4aa   :  { %2232 = vsyncadd [#allocation9], 4294967264 }
 0x4ab   :  { %1727 = vsyncpa [#allocation3], 1 }
 0x4ac   :  { %1728 = vsyncpa [#allocation6], 1 }
 0x4ad   :  { %1729 = vsyncpa [#allocation4], 1 }
 0x4ae   :  { %1730 = vsyncpa [#allocation9], 1 }

</bundles_post_ra>
